<compile_context>
chip_gen: v7x
topology: tpu7x:2x2x1
jax: 0.10.0
libtpu: 0.0.40
codegen_flags: <defaults>
</compile_context>

<pallas_src>
import math

import jax
import jax.numpy as jnp
from jax.experimental import pallas as pl
from jax.experimental.pallas import tpu as pltpu


def _round_up(a: int, b: int) -> int:
    return ((a + b - 1) // b) * b


def _cdiv(a: int, b: int) -> int:
    return (a + b - 1) // b


def _vmem_capacity_bytes() -> int:
    try:
        info = pltpu.get_tpu_info()
        cap = getattr(info, "vmem_capacity_bytes", None)
        if cap:
            return int(cap)
    except Exception:
        pass
    return 64 * 1024 * 1024  # conservative (v7x-sized) fallback


# ----------------------------------------------------------------------------
# Kernels
# ----------------------------------------------------------------------------
def _fused_kernel(x_ref, w_ref, b_ref, o_ref, m_ref, l_ref):
    # x_ref: (tm, D)    w_ref: (D, tn)    b_ref: (1, tn) f32
    # o_ref: (tm, Vp)   -- resident across the vocab ("arbitrary") grid axis
    # m_ref / l_ref: (tm, 1) f32 scratch -- running max / running sum-exp
    j = pl.program_id(1)
    tn = w_ref.shape[1]

    @pl.when(j == 0)
    def _init():
        m_ref[...] = jnp.full(m_ref.shape, -jnp.inf, dtype=m_ref.dtype)
        l_ref[...] = jnp.zeros(l_ref.shape, dtype=l_ref.dtype)

    # Logits for this (row tile, vocab tile): MXU matmul with f32 accumulate.
    logits = jnp.dot(x_ref[...], w_ref[...],
                     preferred_element_type=jnp.float32) + b_ref[...]

    # Stage raw logits into the resident output block; finalized below.
    off = pl.multiple_of(j * tn, 128)
    o_ref[:, pl.ds(off, tn)] = logits.astype(o_ref.dtype)

    # Online max / sum-exp update over the vocab axis.
    m_prev = m_ref[...]
    m_new = jnp.maximum(m_prev, jnp.max(logits, axis=-1, keepdims=True))
    l_ref[...] = (l_ref[...] * jnp.exp(m_prev - m_new)
                  + jnp.sum(jnp.exp(logits - m_new), axis=-1, keepdims=True))
    m_ref[...] = m_new

    # Finalize: log_softmax = logits - (m + log(sum exp(logits - m))).
    @pl.when(j == pl.num_programs(1) - 1)
    def _finalize():
        lse = m_ref[...] + jnp.log(l_ref[...])
        o_ref[...] = o_ref[...] - lse.astype(o_ref.dtype)


def _streaming_kernel(x_ref, w_ref, b_ref, logit_ref, lse_ref, m_ref, l_ref):
    # Large-vocab path: raw logits stream out as (tm, tn) blocks; only the
    # online max / sum-exp stays resident.  lse is emitted per row tile and
    # subtracted by a cheap fused elementwise sweep outside the kernel.
    j = pl.program_id(1)

    @pl.when(j == 0)
    def _init():
        m_ref[...] = jnp.full(m_ref.shape, -jnp.inf, dtype=m_ref.dtype)
        l_ref[...] = jnp.zeros(l_ref.shape, dtype=l_ref.dtype)

    logits = jnp.dot(x_ref[...], w_ref[...],
                     preferred_element_type=jnp.float32) + b_ref[...]
    logit_ref[...] = logits

    m_prev = m_ref[...]
    m_new = jnp.maximum(m_prev, jnp.max(logits, axis=-1, keepdims=True))
    l_ref[...] = (l_ref[...] * jnp.exp(m_prev - m_new)
                  + jnp.sum(jnp.exp(logits - m_new), axis=-1, keepdims=True))
    m_ref[...] = m_new

    @pl.when(j == pl.num_programs(1) - 1)
    def _finalize():
        lse_ref[...] = m_ref[...] + jnp.log(l_ref[...])


# ----------------------------------------------------------------------------
# Tile planning
# ----------------------------------------------------------------------------
def _tile_plan(N, D, V, x_isz, w_isz, budget, force_stream=False):
    # Vocab tile: lane-aligned; cap the double-buffered weight tile at ~8 MiB
    # regardless of d_model (previously tn=2048 could alone exceed the limit).
    weight_tile_budget = 8 * 1024 * 1024
    tn_cap = (weight_tile_budget // max(1, 2 * D * w_isz)) // 128 * 128
    tn_cap = int(min(2048, max(128, tn_cap)))

    V128 = _round_up(V, 128)
    if V128 <= tn_cap:
        tn = V128
    else:
        tn = 0
        if V % 128 == 0:
            # Prefer a tn that divides V exactly: Vp == V means no padded
            # vocab columns and no post-kernel slice copy.
            for cand in range(tn_cap, 127, -128):
                if V % cand == 0:
                    tn = cand
                    break
        if tn == 0:
            tn = tn_cap
    Vp = _round_up(V, tn)

    # Row tile: target 512 (multiple of 8/128 -> feeds the v5e 128x128 and
    # v6e/v7x 256x256 MXUs), shrunk in multiples of 8 until the working set
    # fits the generation-aware VMEM budget.
    tm_target = min(512, _round_up(N, 8))

    def fused_ws(tm_):
        return (2 * tm_ * D * x_isz        # x tile (double buffered)
                + 2 * D * tn * w_isz       # weight tile (double buffered)
                + 2 * tn * 4               # bias tile (f32)
                + 2 * tm_ * Vp * 4         # resident f32 output block
                + 2 * tm_ * 4 * 2)         # m / l scratch

    def stream_ws(tm_):
        return (2 * tm_ * D * x_isz
                + 2 * D * tn * w_isz
                + 2 * tn * 4
                + 2 * tm_ * tn * 4         # streamed f32 logits block
                + 2 * tm_ * 4              # lse output block
                + 2 * tm_ * 4 * 2)

    def shrink(tm_, ws_fn):
        while tm_ > 8 and ws_fn(tm_) > budget:
            tm_ = max(8, (tm_ // 2) // 8 * 8)
        return tm_

    tm_f = shrink(tm_target, fused_ws)
    tm_s = shrink(tm_target, stream_ws)

    # HBM-traffic model: weight re-reads dominate; the streaming variant pays
    # one extra read+write of the (N, Vp) f32 logits for the lse sweep.
    def traffic(tm_, out_passes):
        return (_cdiv(N, tm_) * D * Vp * w_isz
                + out_passes * N * Vp * 4
                + N * D * x_isz)

    fused = (not force_stream
             and fused_ws(tm_f) <= budget
             and traffic(tm_f, 1) <= traffic(tm_s, 3))
    tm = tm_f if fused else tm_s

    # v7x has 2 TensorCores: guarantee >= 2 row tiles so the "parallel" row
    # axis actually shards across both cores for small batch*seq.
    if N > 8:
        while _cdiv(N, tm) < 2 and tm > 8:
            tm = max(8, (tm // 2) // 8 * 8)

    Np = _round_up(N, tm)
    return tm, tn, Np, Vp, fused


# ----------------------------------------------------------------------------
# Public wrapper
# ----------------------------------------------------------------------------
def projection_layer(x, weight, bias, *, out_dtype=jnp.float32,
                     compute_dtype=None, force_stream=False):
    """Fused Linear(d_model -> vocab) + log_softmax(dim=-1).

    x:      [B, S, d_model]
    weight: [d_model, vocab]  (transpose of PyTorch nn.Linear's .weight)
    bias:   [vocab]
    Returns log-probabilities of shape [B, S, vocab] in `out_dtype`.
    """
    B, S, D = x.shape
    V = weight.shape[1]
    N = B * S

    if compute_dtype is not None:
        # Optional bf16 matmul inputs (3-6x MXU throughput on v6e/v7x and
        # half the weight HBM stream); accumulation / lse math stays f32.
        x = x.astype(compute_dtype)
        weight = weight.astype(compute_dtype)

    x_isz = jnp.dtype(x.dtype).itemsize
    w_isz = jnp.dtype(weight.dtype).itemsize

    # Generation-aware VMEM plan: ~48 MiB limit / ~40 MiB budget on v7x
    # (64 MiB physical), ~96 MiB limit / ~88 MiB budget on v5e/v6e (128 MiB).
    vmem_cap = _vmem_capacity_bytes()
    vmem_limit = int(min(vmem_cap * 3 // 4, 100 * 1024 * 1024))
    budget = max(16 * 1024 * 1024, vmem_limit - 8 * 1024 * 1024)

    tm, tn, Np, Vp, fused = _tile_plan(N, D, V, x_isz, w_isz, budget,
                                       force_stream=force_stream)

    x2 = x.reshape(N, D)
    if Np != N:
        x2 = jnp.pad(x2, ((0, Np - N), (0, 0)))          # zero-pad rows
    w2 = weight
    b2 = bias.reshape(1, V).astype(jnp.float32)
    if Vp != V:
        # Padded vocab columns: zero weights + very negative bias so they
        # contribute nothing to the softmax normalizer.
        w2 = jnp.pad(w2, ((0, 0), (0, Vp - V)))
        b2 = jnp.pad(b2, ((0, 0), (0, Vp - V)), constant_values=-1e30)

    grid = (Np // tm, Vp // tn)

    cost = pl.CostEstimate(
        flops=int(2 * Np * D * Vp),
        transcendentals=int(Np * Vp),
        bytes_accessed=int(Np * D * x_isz + grid[0] * D * Vp * w_isz
                           + Np * Vp * 4),
    )
    cparams = pltpu.CompilerParams(
        dimension_semantics=("parallel", "arbitrary"),
        vmem_limit_bytes=vmem_limit,
    )
    in_specs = [
        pl.BlockSpec((tm, D), lambda i, j: (i, 0)),   # row tile of x (resident over j)
        pl.BlockSpec((D, tn), lambda i, j: (0, j)),   # streaming weight tile
        pl.BlockSpec((1, tn), lambda i, j: (0, j)),   # bias tile
    ]

    if fused:
        out = pl.pallas_call(
            _fused_kernel,
            out_shape=jax.ShapeDtypeStruct((Np, Vp), out_dtype),
            grid_spec=pltpu.PrefetchScalarGridSpec(
                num_scalar_prefetch=0,
                grid=grid,
                in_specs=in_specs,
                # Full-vocab output block per row tile, resident across the
                # vocab axis: logits staged + finalized in VMEM, written back
                # to HBM exactly once per row tile.
                out_specs=pl.BlockSpec((tm, Vp), lambda i, j: (i, 0)),
                scratch_shapes=[pltpu.VMEM((tm, 1), jnp.float32),   # running max
                                pltpu.VMEM((tm, 1), jnp.float32)],  # running sum-exp
            ),
            compiler_params=cparams,
            cost_estimate=cost,
        )(x2, w2, b2)
    else:
        logits, lse = pl.pallas_call(
            _streaming_kernel,
            out_shape=(jax.ShapeDtypeStruct((Np, Vp), jnp.float32),
                       jax.ShapeDtypeStruct((Np, 1), jnp.float32)),
            grid_spec=pltpu.PrefetchScalarGridSpec(
                num_scalar_prefetch=0,
                grid=grid,
                in_specs=in_specs,
                out_specs=[
                    pl.BlockSpec((tm, tn), lambda i, j: (i, j)),  # streamed logits
                    pl.BlockSpec((tm, 1), lambda i, j: (i, 0)),   # per-row lse
                ],
                scratch_shapes=[pltpu.VMEM((tm, 1), jnp.float32),
                                pltpu.VMEM((tm, 1), jnp.float32)],
            ),
            compiler_params=cparams,
            cost_estimate=cost,
        )(x2, w2, b2)
        # Cheap second sweep (one fused XLA elementwise pass): subtract the
        # per-row logsumexp.  Buys a much larger tm -> fewer weight re-reads.
        out = (logits - lse).astype(out_dtype)

    if Np != N or Vp != V:
        out = out[:N, :V]
    return out.reshape(B, S, V)


if __name__ == "__main__":
    # Small shapes consistent with the module: batch=2, seq=8, d_model=32,
    # vocab_size=128.
    B, S, D, V = 2, 8, 32, 128

    key = jax.random.PRNGKey(0)
    kx, kw, kb = jax.random.split(key, 3)

    bound = 1.0 / math.sqrt(D)
    x = jax.random.normal(kx, (B, S, D), dtype=jnp.float32)
    # Deterministic init mimicking nn.Linear's uniform(-1/sqrt(D), 1/sqrt(D)).
    weight = jax.random.uniform(kw, (D, V), minval=-bound, maxval=bound,
                                dtype=jnp.float32)
    bias = jax.random.uniform(kb, (V,), minval=-bound, maxval=bound,
                              dtype=jnp.float32)

    # Reference: same math as torch.log_softmax(self.fc(x), dim=-1).
    ref = jax.nn.log_softmax(jnp.einsum("bsd,dv->bsv", x, weight) + bias,
                             axis=-1)

    # 1) Default plan (fused resident-output path at this vocab size).
    out = jax.block_until_ready(projection_layer(x, weight, bias))
    assert out.shape == (B, S, V) and out.dtype == jnp.float32
    assert jnp.allclose(out, ref, atol=1e-5, rtol=1e-5), "fused path mismatch"

    # 2) Streaming (large-vocab) path, forced for coverage at small shapes.
    out_s = jax.block_until_ready(
        projection_layer(x, weight, bias, force_stream=True))
    assert jnp.allclose(out_s, ref, atol=1e-5, rtol=1e-5), "stream path mismatch"

    # 3) Ragged rows + ragged vocab (exercises zero row padding and the
    #    -1e30 bias padding of padded vocab columns).
    B2, S2, V2 = 2, 5, 100
    x2 = jax.random.normal(kx, (B2, S2, D), dtype=jnp.float32)
    w2 = jax.random.uniform(kw, (D, V2), minval=-bound, maxval=bound,
                            dtype=jnp.float32)
    b2 = jax.random.uniform(kb, (V2,), minval=-bound, maxval=bound,
                            dtype=jnp.float32)
    ref2 = jax.nn.log_softmax(jnp.einsum("bsd,dv->bsv", x2, w2) + b2, axis=-1)
    out2 = jax.block_until_ready(projection_layer(x2, w2, b2))
    assert out2.shape == (B2, S2, V2)
    assert jnp.allclose(out2, ref2, atol=1e-5, rtol=1e-5), "ragged mismatch"

    print("KERNEL_OK")
</pallas_src>

<mosaic_0001>
module attributes {stable_mosaic.version = 11 : i64} {
  func.func @_fused_kernel(%arg0: i32, %arg1: i32, %arg2: memref<8x32xf32, #tpu.memory_space<vmem>>, %arg3: memref<32x128xf32, #tpu.memory_space<vmem>>, %arg4: memref<1x128xf32, #tpu.memory_space<vmem>>, %arg5: memref<8x128xf32, #tpu.memory_space<vmem>>, %arg6: memref<8x1xf32, #tpu.memory_space<vmem>>, %arg7: memref<8x1xf32, #tpu.memory_space<vmem>>) attributes {dimension_semantics = [#tpu.dimension_semantics<parallel>, #tpu.dimension_semantics<arbitrary>], iteration_bounds = array<i64: 2, 1>, scalar_prefetch = 0 : i64, scratch_operands = 2 : i64, tpu.core_type = #tpu.core_type<tc>, window_params = [{transform_indices = @transform_0, window_bounds = array<i64: 8, 32>}, {transform_indices = @transform_1, window_bounds = array<i64: 32, 128>}, {transform_indices = @transform_2, window_bounds = array<i64: 1, 128>}, {transform_indices = @transform_3, window_bounds = array<i64: 8, 128>}]} {
    %c0_i32 = arith.constant 0 : i32
    %0 = arith.cmpi eq, %arg1, %c0_i32 : i32
    %1 = arith.extui %0 : i1 to i32
    %c0_i32_0 = arith.constant 0 : i32
    %2 = arith.cmpi ne, %1, %c0_i32_0 : i32
    scf.if %2 {
      %cst_19 = arith.constant 0xFF800000 : f32
      %32 = vector.broadcast %cst_19 : f32 to vector<8x1xf32>
      %c0_20 = arith.constant 0 : index
      %c0_21 = arith.constant 0 : index
      %33 = vector.load %arg6[%c0_20, %c0_21] : memref<8x1xf32, #tpu.memory_space<vmem>>, vector<8x1xf32>
      tpu.vector_store %arg6[%c0_20, %c0_21], %32 {strides = array<i32>} : memref<8x1xf32, #tpu.memory_space<vmem>>, vector<8x1xf32>,
      %cst_22 = arith.constant 0.000000e+00 : f32
      %34 = vector.broadcast %cst_22 : f32 to vector<8x1xf32>
      %c0_23 = arith.constant 0 : index
      %c0_24 = arith.constant 0 : index
      %35 = vector.load %arg7[%c0_23, %c0_24] : memref<8x1xf32, #tpu.memory_space<vmem>>, vector<8x1xf32>
      tpu.vector_store %arg7[%c0_23, %c0_24], %34 {strides = array<i32>} : memref<8x1xf32, #tpu.memory_space<vmem>>, vector<8x1xf32>,
    } else {
    }
    %c0 = arith.constant 0 : index
    %c0_1 = arith.constant 0 : index
    %3 = vector.load %arg2[%c0, %c0_1] : memref<8x32xf32, #tpu.memory_space<vmem>>, vector<8x32xf32>
    %c0_2 = arith.constant 0 : index
    %c0_3 = arith.constant 0 : index
    %4 = vector.load %arg3[%c0_2, %c0_3] : memref<32x128xf32, #tpu.memory_space<vmem>>, vector<32x128xf32>
    %cst = arith.constant dense<0.000000e+00> : vector<8x128xf32>
    %5 = tpu.matmul %3, %4, %cst {dimension_numbers = #tpu.dot_dimension_numbers<[1], [0], [0], [1], [0, 0, 1, 1], [], []>} : vector<8x32xf32>, vector<32x128xf32>, vector<8x128xf32> -> vector<8x128xf32>
    %c0_4 = arith.constant 0 : index
    %c0_5 = arith.constant 0 : index
    %6 = vector.load %arg4[%c0_4, %c0_5] : memref<1x128xf32, #tpu.memory_space<vmem>>, vector<1x128xf32>
    %7 = vector.broadcast %6 : vector<1x128xf32> to vector<8x128xf32>
    %8 = arith.addf %5, %7 : vector<8x128xf32>
    %c128_i32 = arith.constant 128 : i32
    %9 = arith.muli %arg1, %c128_i32 : i32
    %10 = tpu.assume_multiple %9, 128 : i32
    %c0_6 = arith.constant 0 : index
    %11 = arith.index_cast %10 : i32 to index
    %12 = vector.load %arg5[%c0_6, %11] : memref<8x128xf32, #tpu.memory_space<vmem>>, vector<8x128xf32>
    tpu.vector_store %arg5[%c0_6, %11], %8 {strides = array<i32>} : memref<8x128xf32, #tpu.memory_space<vmem>>, vector<8x128xf32>,
    %c0_7 = arith.constant 0 : index
    %c0_8 = arith.constant 0 : index
    %13 = vector.load %arg6[%c0_7, %c0_8] : memref<8x1xf32, #tpu.memory_space<vmem>>, vector<8x1xf32>
    %cst_9 = arith.constant dense<0xFF800000> : vector<8xf32>
    %14 = vector.multi_reduction <maximumf>, %8, %cst_9 [1] : vector<8x128xf32> to vector<8xf32>
    %15 = vector.shape_cast %14 : vector<8xf32> to vector<8x1xf32>
    %16 = arith.maximumf %13, %15 : vector<8x1xf32>
    %c0_10 = arith.constant 0 : index
    %c0_11 = arith.constant 0 : index
    %17 = vector.load %arg7[%c0_10, %c0_11] : memref<8x1xf32, #tpu.memory_space<vmem>>, vector<8x1xf32>
    %18 = arith.subf %13, %16 : vector<8x1xf32>
    %19 = math.exp %18 : vector<8x1xf32>
    %20 = arith.mulf %17, %19 : vector<8x1xf32>
    %21 = vector.broadcast %16 : vector<8x1xf32> to vector<8x128xf32>
    %22 = arith.subf %8, %21 : vector<8x128xf32>
    %23 = math.exp %22 : vector<8x128xf32>
    %cst_12 = arith.constant dense<0.000000e+00> : vector<8xf32>
    %24 = vector.multi_reduction <add>, %23, %cst_12 [1] : vector<8x128xf32> to vector<8xf32>
    %25 = vector.shape_cast %24 : vector<8xf32> to vector<8x1xf32>
    %26 = arith.addf %20, %25 : vector<8x1xf32>
    %c0_13 = arith.constant 0 : index
    %c0_14 = arith.constant 0 : index
    %27 = vector.load %arg7[%c0_13, %c0_14] : memref<8x1xf32, #tpu.memory_space<vmem>>, vector<8x1xf32>
    tpu.vector_store %arg7[%c0_13, %c0_14], %26 {strides = array<i32>} : memref<8x1xf32, #tpu.memory_space<vmem>>, vector<8x1xf32>,
    %c0_15 = arith.constant 0 : index
    %c0_16 = arith.constant 0 : index
    %28 = vector.load %arg6[%c0_15, %c0_16] : memref<8x1xf32, #tpu.memory_space<vmem>>, vector<8x1xf32>
    tpu.vector_store %arg6[%c0_15, %c0_16], %16 {strides = array<i32>} : memref<8x1xf32, #tpu.memory_space<vmem>>, vector<8x1xf32>,
    %c0_i32_17 = arith.constant 0 : i32
    %29 = arith.cmpi eq, %arg1, %c0_i32_17 : i32
    %30 = arith.extui %29 : i1 to i32
    %c0_i32_18 = arith.constant 0 : i32
    %31 = arith.cmpi ne, %30, %c0_i32_18 : i32
    scf.if %31 {
      %c0_19 = arith.constant 0 : index
      %c0_20 = arith.constant 0 : index
      %32 = vector.load %arg6[%c0_19, %c0_20] : memref<8x1xf32, #tpu.memory_space<vmem>>, vector<8x1xf32>
      %c0_21 = arith.constant 0 : index
      %c0_22 = arith.constant 0 : index
      %33 = vector.load %arg7[%c0_21, %c0_22] : memref<8x1xf32, #tpu.memory_space<vmem>>, vector<8x1xf32>
      %34 = math.log %33 : vector<8x1xf32>
      %35 = arith.addf %32, %34 : vector<8x1xf32>
      %c0_23 = arith.constant 0 : index
      %c0_24 = arith.constant 0 : index
      %36 = vector.load %arg5[%c0_23, %c0_24] : memref<8x128xf32, #tpu.memory_space<vmem>>, vector<8x128xf32>
      %37 = vector.broadcast %35 : vector<8x1xf32> to vector<8x128xf32>
      %38 = arith.subf %36, %37 : vector<8x128xf32>
      %c0_25 = arith.constant 0 : index
      %c0_26 = arith.constant 0 : index
      %39 = vector.load %arg5[%c0_25, %c0_26] : memref<8x128xf32, #tpu.memory_space<vmem>>, vector<8x128xf32>
      tpu.vector_store %arg5[%c0_25, %c0_26], %38 {strides = array<i32>} : memref<8x128xf32, #tpu.memory_space<vmem>>, vector<8x128xf32>,
    } else {
    }
    return
  }
  func.func @transform_0(%arg0: i32, %arg1: i32) -> (i32, i32) {
    %c0_i32 = arith.constant 0 : i32
    %c0_i32_0 = arith.constant 0 : i32
    return %arg0, %c0_i32 : i32, i32
  }
  func.func @transform_1(%arg0: i32, %arg1: i32) -> (i32, i32) {
    %c0_i32 = arith.constant 0 : i32
    %c0_i32_0 = arith.constant 0 : i32
    return %c0_i32, %arg1 : i32, i32
  }
  func.func @transform_2(%arg0: i32, %arg1: i32) -> (i32, i32) {
    %c0_i32 = arith.constant 0 : i32
    %c0_i32_0 = arith.constant 0 : i32
    return %c0_i32, %arg1 : i32, i32
  }
  func.func @transform_3(%arg0: i32, %arg1: i32) -> (i32, i32) {
    %c0_i32 = arith.constant 0 : i32
    %c0_i32_0 = arith.constant 0 : i32
    return %arg0, %c0_i32 : i32, i32
  }
}

</mosaic_0001>

<bundles_post_ra>
// kernel: tpu_custom_call.1
= control target key start
LH: loop header
LB: loop body
LE: loop exit
PB: predicated region body
PF: predicated region fallthrough
CT: control target
= control target key end

     0   :  { %8 = vsyncpa [#allocation5], 0  ;;  %s1017_s0 = inlined_call_operand.hbm [shape: f32[16,32], index: 0, kind: input, shape index: {}]   ;;  %s1018_s1 = inlined_call_operand.hbm [shape: f32[32,128], index: 1, kind: input, shape index: {}]   ;;  %s1019_s2 = inlined_call_operand.vmem [shape: f32[1,128], index: 2, kind: input, shape index: {}]   ;;  %s1020_s3 = inlined_call_operand.hbm [shape: f32[16,128], index: 3, kind: output, shape index: {}]  }
   0x1   :  { %10 = vsyncpa [#allocation5 + $0x1], 0 }
   0x2   :  { %11 = vsyncpa [#allocation8], 0 }
   0x3   :  { %12 = vsyncpa [#allocation6], 0 }
   0x4   :  { %14 = vsyncpa [#allocation6 + $0x1], 0  ;;  %s792_s12 = smov 0   ;;  %s794_s13 = smov 0  }
   0x5   :  { %s796_s14 = smov 0   ;;  %s798_s15 = smov 0  }
   0x6   :  { %s800_s16 = smov 0   ;;  %s802_s17 = smov 0  }
   0x7 LB: > { %s488_s18 = sadd.s32 4294967295, %s760_s17   ;;  %s489_s19 = sadd.s32 4294967294, %s760_s17   ;;  %s760_s17 = sphi %s802_s17, %s20_s17   ;;  %s756_s16 = sphi %s800_s16, %s1044_s16   ;;  %s752_s15 = sphi %s798_s15, %s1043_s15   ;;  %s748_s14 = sphi %s796_s14, %s1042_s14   ;;  %s744_s13 = sphi %s794_s13, %s1041_s13   ;;  %s740_s12 = sphi %s792_s12, %s1040_s12  }
   0x8   : > { %p52_p0 = scmp.ne.s32.totalorder %s744_s13, %s740_s12  ;;  %p826_p1 = scmp.eq.s32.totalorder %s488_s18, 0 }
   0x9   : > { %p830_p2 = scmp.eq.s32.totalorder %s488_s18, 1  ;;  %p134_p3 = scmp.eq.s32.totalorder %s489_s19, 1 }
   0xa   : > { %s1025_s20 = scalar_select %p826_p1, 1, 0 }
   0xb   : > { %s1026_s21 = scalar_select %p830_p2, 1, 0 }
   0xc   : > { %p836_p4 = por %p826_p1, %p52_p0  ;;  %p490_p5 = scmp.ge.s32.totalorder %s760_s17, 1 }
   0xd   : > { %p841_p6 = por %p134_p3, %p52_p0  ;;  %p141_p7 = scmp.lt.s32.totalorder %s760_s17, 3 }
   0xe   : > { %s1027_s22 = scalar_select %p836_p4, 1, 0 }
   0xf   : > { %s1028_s23 = scalar_select %p841_p6, 1, 0 }
  0x10   : > { %p846_p8 = pnand %p490_p5, %p141_p7  ;;  %s762_s25 = smov [#allocation7]  }
  0x11   : > { %s155_s26 = sshll.u32 %s762_s25, 4  ;;  %s32_s28 = sadd.s32 1, %s756_s16  ;;  %s156_s26 = int_to_ptr.vmem [resolvable:$true] %s155_s26 }
  0x12   : > { %s1029_s24 = scalar_select %p846_p8, 1, 0 }
  0x13   : > { %p536_p9 = pneg %p846_p8  ;;  %s616_s4 = scalar_lea.hbm %s1018_s1, 512 }
  0x14   : > { %p617_p12 = scmp.ne.s32.totalorder %s1018_s1, %s616_s4  ;;  %p623_p5 = scmp.lt.u32.totalorder %s616_s4, %s1018_s1 }
  0x15   : > { %p855_p11 = pnand %p536_p9, %p826_p1 }
  0x17   : > { %p618_p13 = pneg %p855_p11 }
  0x19   : > { %p619_p0 = pnand %p618_p13, %p617_p12 }
  0x1b   : > { %p620_p3 = pneg %p619_p0 }
  0x1d   : > { %p625_p7 = pnand %p623_p5, %p620_p3 }
  0x1f   : > { %628 = shalt.err (!%p625_p7)
}
  0x20   : > { %s629_s9 = scalar_lea.vmem %s156_s26, 512  ;;  %p637_p1 = scmp.lt.s32.totalorder %s156_s26, %s156_s26 }
  0x21   : > { %p630_p9 = scmp.ne.s32.totalorder %s156_s26, %s629_s9  ;;  %p638_p4 = scmp.lt.s32.totalorder %s629_s9, %s629_s9 }
  0x23   : > { %p632_p10 = pnand %p630_p9, %p618_p13  ;;  %p639_p8 = por %p638_p4, %p637_p1 }
  0x25   : > { %p633_p6 = pneg %p632_p10 }
  0x27   : > { %p640_p2 = pnand %p639_p8, %p633_p6 }
  0x29   : > { %643 = shalt.err (!%p640_p2)
}
  0x2a   : > { %s763_s10 = smov 128   ;;  %s764_s11 = smov 8  }
  0x2b   : > { %539 = dma.hbm_to_vmem [thread:$0]  (!%p855_p11), %s1018_s1, 512, %s156_s26, [#allocation8], %s763_s10, %s763_s10, %s764_s11  }
  0x2c   : > { %p34_p1 = scmp.ge.s32.totalorder %s32_s28, 2  ;;  %s39_s25 = sadd.s32 1, %s748_s14 }
  0x2d   : > { %p46_p2 = scmp.ne.s32.totalorder %s748_s14, %s744_s13  ;;  %p47_p4 = scmp.eq.s32.totalorder %s760_s17, 0 }
  0x2e   : > { %s1046_s28 = smov (%p34_p1, %s32_s28), 0  ;;  %p1032_p8 = scmp.ne.s32.totalorder %s1026_s21, 0 }
  0x2f   : > { %p882_p6 = por %p47_p4, %p46_p2  ;;  %s36_s27 = ssub.s32 %s756_s16, %s1046_s28 }
  0x30   : > { %p888_p10 = por %p1032_p8, %p46_p2  ;;  %p549_p12 = scmp.lt.s32.totalorder %s760_s17, 2 }
  0x31   : > { %p37_p11 = scmp.eq.s32.totalorder %s36_s27, 0  ;;  %s175_s26 = sand.u32 1, %s748_s14  }
  0x32   : > { %s494_s4 = sshll.u32 %s175_s26, 3  ;;  %s495_s6 = sshll.u32 %s756_s16, 7 }
  0x33   : > { %s897_s5 = scalar_select %p37_p11, %s748_s14, %s39_s25  }
  0x34   : > { %s903_s9 = scalar_lea.hbm %s1017_s0, %s495_s6  ;;  %s179_s21 = scalar_lea.vmem [#allocation4], %s494_s4 }
  0x35   : > { %s186_s10 = sshll.u32 %s179_s21, 4  ;;  %p909_p13 = pnand %p549_p12, %p882_p6  ;;  %s905_s10 = int_to_ptr.vmem [resolvable:$true] %s186_s10 }
  0x36   : > { %s176_s18 = scalar_lea.sflag [#allocation5], %s175_s26  ;;  %s644_s19 = scalar_lea.hbm %s903_s9, 128 }
  0x37   : > { %p645_p0 = scmp.ne.s32.totalorder %s903_s9, %s644_s19  ;;  %p646_p3 = pneg %p909_p13 }
  0x38   : > { %s649_s4 = scalar_lea.hbm %s1017_s0, 256  ;;  %p650_p9 = scmp.lt.u32.totalorder %s903_s9, %s1017_s0 }
  0x39   : > { %p647_p5 = pnand %p646_p3, %p645_p0  ;;  %p651_p1 = scmp.lt.u32.totalorder %s649_s4, %s644_s19 }
  0x3a   : > { %p653_p4 = scmp.lt.u32.totalorder %s644_s19, %s903_s9 }
  0x3b   : > { %p648_p7 = pneg %p647_p5  ;;  %p652_p2 = por %p651_p1, %p650_p9 }
  0x3d   : > { %p654_p6 = por %p653_p4, %p652_p2 }
  0x3f   : > { %p655_p8 = pnand %p654_p6, %p648_p7 }
  0x41   : > { %658 = shalt.err (!%p655_p8)
}
  0x42   : > { %s659_s26 = scalar_lea.vmem %s905_s10, 128  ;;  %s765_s7 = smov [#allocation4]  }
  0x43   : > { %p660_p12 = scmp.ne.s32.totalorder %s905_s10, %s659_s26  ;;  %s664_s8 = sshll.u32 %s765_s7, 4  ;;  %s665_s8 = int_to_ptr.vmem [resolvable:$false] %s664_s8 }
  0x44   : > { %s666_s21 = scalar_lea.vmem %s665_s8, 256  ;;  %p667_p5 = scmp.lt.s32.totalorder %s905_s10, %s665_s8 }
  0x45   : > { %p662_p11 = pnand %p660_p12, %p646_p3  ;;  %p668_p9 = scmp.lt.s32.totalorder %s666_s21, %s659_s26 }
  0x47   : > { %p663_p0 = pneg %p662_p11  ;;  %p669_p1 = por %p668_p9, %p667_p5 }
  0x49   : > { %p670_p2 = pnand %p669_p1, %p663_p0 }
  0x4b   : > { %673 = shalt.err (!%p670_p2)
}
  0x4c   : > { %543 = dma.hbm_to_vmem [thread:$0]  (!%p909_p13), %s903_s9, 128, %s905_s10, %s176_s18  }
  0x4d   : > { %p1035_p7 = scmp.ne.s32.totalorder %s1029_s24, 0 }
  0x4e   : > { %s941_s19 = sand.u32 (!%p1035_p7), 1, %s744_s13   ;;  %p1036_p3 = scmp.ne.s32.totalorder (!%p1035_p7), %s1027_s22, 0 }
  0x4f   : > { %195 = sbr.rel (%p1035_p7) target bundleno = 913 (0x391), region = 32  ;;  %s497_s25 = sshll.u32 (!%p1035_p7), %s941_s19, 3 }
  0x50   : > { %s198_s27 = scalar_lea.sflag (!%p1035_p7), [#allocation5], %s941_s19  ;;  %s201_s4 = scalar_lea.vmem (!%p1035_p7), [#allocation4], %s497_s25 }
  0x56   : > { %727 = dma.done.wait (%p1036_p3), %s198_s27, 128  }
  0x57   : > { %729 = vsyncadd (%p1036_p3), %s198_s27, 4294967168  ;;  %p1037_p13 = scmp.ne.s32.totalorder %s1025_s20, 0 }
  0x59   : > { %731 = dma.done.wait (%p1037_p13), [#allocation8], 512  }
  0x5a   : > { %733 = vsyncadd (%p1037_p13), [#allocation8], 4294966784  ;;  %vm238_vm0 = vcmask 7168   ;;  %v766_v0 = vmov 0.0|0.0   ;;  %v767_v1 = vmov -inf   ;;  %v768_v2 = vmov 0.0  }
  0x5b   : > { %522 = vmatprep.subr.bf16.mxu0 %v766_v0  ;;  %239 = vst.msk [vmem:[#allocation2] sm:$0xff] %vm238_vm0, %v767_v1  ;;  %240 = vst.msk [vmem:[#allocation3] sm:$0xff] %vm238_vm0, %v768_v2  ;;  %vm769_vm1 = vmmov 0   ;;  %v242_v3 = vld [vmem:[#allocation7] sm:$0xff]  ;;  %v243_v4 = vld [vmem:[#allocation7 + $0x8] sm:$0xff]  ;;  %vm253_vm2 = vcmask 261120  }
  0x5c   : > { %519 = vmatprep.mubr.msk.f32.mxu0 %vm769_vm1, %v768_v2  ;;  %v244_v5 = vld [vmem:[#allocation7 + $0x10] sm:$0xff]  ;;  %v523_v6 = vpack.c.bf16 %v243_v4, %v242_v3  ;;  %v245_v7 = vld [vmem:[#allocation7 + $0x18] sm:$0xff]  ;;  %v500_v10 = vld [vmem:[%s1019_s2] ss:$0 sm:$0xff]  ;;  %v770_v14 = vmov 0   ;;  %s503_s24 = sshll.u32 %s752_s15, 7 }
  0x5d   : > { %v526_v8 = vpack.c.bf16 %v245_v7, %v244_v5  ;;  %v241_v9 = vld [vmem:[%s201_s4] sm:$0xff]  ;;  %608 = vset.pattern.permute.xlu0 %v770_v14  ;;  %609 = vset.pattern.permute.xlu1 %v770_v14  ;;  %s230_s9 = scalar_lea.vmem [#allocation9], %s497_s25  ;;  %s968_s29 = scalar_lea.hbm %s1020_s3, %s503_s24 }
  0x5e   : > { %524 = vmatpush3.bf16.msra.mxu0 %v523_v6  ;;  %s385_s10 = sshll.u32 %s230_s9, 4  ;;  %s372_s6 = scalar_lea.sflag [#allocation6], %s941_s19  ;;  %s970_s10 = int_to_ptr.vmem [resolvable:$true] %s385_s10 }
  0x5f   : > { %525 = vmatprep.subr.bf16.mxu0 %v766_v0  ;;  %s674_s26 = scalar_lea.vmem %s970_s10, 128  ;;  %s771_s15 = smov [#allocation9]  }
  0x60   : > { %p675_p4 = scmp.ne.s32.totalorder %s970_s10, %s674_s26  ;;  %s678_s7 = sshll.u32 %s771_s15, 4  ;;  %s679_s7 = int_to_ptr.vmem [resolvable:$false] %s678_s7 }
  0x61   : > { %s680_s8 = scalar_lea.vmem %s679_s7, 256  ;;  %p681_p12 = scmp.lt.s32.totalorder %s970_s10, %s679_s7 }
  0x62   : > { %527 = vmatpush3.bf16.msra.mxu0 %v526_v8  ;;  %v332_v15 = vld [vmem:[#allocation2] sm:$0xff]  ;;  %v336_v25 = vld [vmem:[#allocation3] sm:$0xff]  ;;  %p676_p6 = pnand %p675_p4, %p888_p10  ;;  %p682_p11 = scmp.lt.s32.totalorder %s680_s8, %s674_s26 }
  0x64   : > { %p677_p8 = pneg %p676_p6  ;;  %p683_p0 = por %p682_p11, %p681_p12 }
  0x65   : > { %520 = vmatmul.mubr.msk.f32.vlgmr.msra.gmra.mrb[0].mxu0 %vm253_vm2, %v241_v9 }
  0x66   : > { %p684_p5 = pnand %p683_p0, %p677_p8 }
 0x138   : > { %v323_v11 = vpop.f32.mrb[0].mxu0 }
 0x139   : > { %v324_v12 = vadd.f32 %v500_v10, %v323_v11  ;;  %v521_v13 = vpop.f32.mrb[1].mxu0 }
 0x13b   : > { %333 = vmax.xlane.f32.xlu0 %v324_v12 }
 0x1c8   : > { %v334_v16 = vpop.xlane.xlu0 %333 }
 0x1c9   : > { %v335_v17 = vmax.f32 %v332_v15, %v334_v16 }
 0x1cb   : > { %v337_v18 = vsub.f32 %v332_v15, %v335_v17  ;;  %354 = vst.msk [vmem:[#allocation2] sm:$0xff] %vm238_vm0, %v335_v17  ;;  %343 = vperm.xlu0 %608, %v335_v17  }
 0x1cd   : > { %v338_v23 = vmul.f32 1.442695, %v337_v18 }
 0x1d2   : > { %v358_v32 = vld [vmem:[#allocation2] sm:$0xff] }
 0x24a   : > { %v344_v19 = vpop.permute.xlu0 %343 }
 0x24b   : > { %v346_v20 = vsub.f32 %v324_v12, %v344_v19 }
 0x24d   : > { %v347_v21 = vmul.f32 1.442695, %v346_v20 }
 0x24f   : > { %610 = vpow2.f32 %v347_v21 }
 0x250   : > { %612 = vpow2.f32 %v338_v23 }
 0x259   : > { %v611_v22 = vpop.eup %610 }
 0x25a   : > { %349 = vadd.xlane.f32.xlu1 %v611_v22  ;;  %v613_v24 = vpop.eup %612 }
 0x25b   : > { %v340_v26 = vmul.f32 %v613_v24, %v336_v25 }
 0x2e7   : > { %v350_v27 = vpop.xlane.xlu1 %349 }
 0x2e8   : > { %v351_v28 = vadd.f32 %v350_v27, %v340_v26 }
 0x2ea   : > { %353 = vst.msk [vmem:[#allocation3] sm:$0xff] %vm238_vm0, %v351_v28 }
 0x2f1   : > { %v359_v29 = vld [vmem:[#allocation3] sm:$0xff] }
 0x2f2   : > { %614 = vlog2.f32 %v359_v29 }
 0x2fc   : > { %v615_v30 = vpop.eup %614 }
 0x2fd   : > { %v361_v31 = vmul.f32 0.6931472, %v615_v30 }
 0x2ff   : > { %v362_v33 = vadd.f32 %v361_v31, %v358_v32 }
 0x301   : > { %366 = vperm.xlu1 %609, %v362_v33  }
 0x380   : > { %v367_v34 = vpop.permute.xlu1 %366 }
 0x381   : > { %v369_v35 = vsub.f32 %v324_v12, %v367_v34 }
 0x383   : > { %370 = vst [vmem:[%s230_s9] sm:$0xff] %v369_v35 }
 0x384   : > { %687 = shalt.err (!%p684_p5)
}
 0x385   : > { %s688_s21 = scalar_lea.hbm %s968_s29, 128  ;;  %s692_s27 = scalar_lea.hbm %s1020_s3, 256 }
 0x386   : > { %p689_p9 = scmp.ne.s32.totalorder %s968_s29, %s688_s21  ;;  %p693_p7 = scmp.lt.u32.totalorder %s968_s29, %s1020_s3 }
 0x387   : > { %p694_p3 = scmp.lt.u32.totalorder %s692_s27, %s688_s21  ;;  %p696_p4 = scmp.lt.u32.totalorder %s688_s21, %s968_s29 }
 0x388   : > { %p690_p1 = pnand %p689_p9, %p888_p10 }
 0x389   : > { %p695_p13 = por %p694_p3, %p693_p7 }
 0x38a   : > { %p691_p2 = pneg %p690_p1 }
 0x38b   : > { %p697_p6 = por %p696_p4, %p695_p13 }
 0x38d   : > { %p698_p8 = pnand %p697_p6, %p691_p2 }
 0x38f   : > { %701 = shalt.err (!%p698_p8)
}
 0x390   : > { %534 = dma.vmem_to_hbm [thread:$0]  (%p888_p10), %s970_s10, 128, %s968_s29, %s372_s6  }
 0x391 PF: > { %s397_s22 = sand.u32 1, %s740_s12   ;;  %p1038_p12 = scmp.ne.s32.totalorder %s1028_s23, 0 }
 0x392   : > { %p1039_p11 = scmp.ge.s32.totalorder %s760_s17, 2  ;;  %s398_s24 = scalar_lea.sflag [#allocation6], %s397_s22 }
 0x394   : > { %p545_p0 = pnand %p1039_p11, %p1038_p12 }
 0x396   : > { %735 = dma.done.wait (!%p545_p0), %s398_s24, 128  }
 0x397   : > { %737 = vsyncadd (!%p545_p0), %s398_s24, 4294967168  ;;  %s20_s17 = sadd.s32 1, %s760_s17   ;;  %s1040_s12 = smov %s744_s13 }
 0x398   : > { %p17_p5 = scmp.ge.s32.totalorder %s20_s17, 4   ;;  %s1041_s13 = smov %s748_s14 }
 0x399   : > { %s1042_s14 = smov %s897_s5  ;;  %s1043_s15 = smov %s756_s16 }
 0x39a   : > { %s1044_s16 = smov %s1046_s28  ;;  %19 = sbr.rel (!%p17_p5) target bundleno = 7 (0x7), region = 94 }
 0x3a1   :  { %403 = vsyncpa [#allocation5], 1 }
 0x3a2   :  { %405 = vsyncpa [#allocation5 + $0x1], 1 }
 0x3a3   :  { %406 = vsyncpa [#allocation8], 1 }
 0x3a4   :  { %407 = vsyncpa [#allocation6], 1 }
 0x3a5   :  { %409 = vsyncpa [#allocation6 + $0x1], 1 }

</bundles_post_ra>
